<compile_context>
chip_gen: v7x
topology: tpu7x:2x2x1
jax: 0.10.0
libtpu: 0.0.40
codegen_flags: <defaults>
</compile_context>

<pallas_src>
import jax
import jax.numpy as jnp
from jax import lax
from jax.experimental import pallas as pl
from jax.experimental.pallas import tpu as pltpu

IN, H1, H2, OUT = 8, 6, 4, 1
LANE = 128                    # lanes per vreg
SUB = 8                       # f32 sublanes per vreg
MIN_BLOCK = SUB * LANE        # 1024 samples = one (8,128) f32 vreg per feature
MAX_BLOCK = 128 * 1024        # per-step batch tile; double-buffered x ~= 8 MiB
CHUNK = SUB                   # sublane rows per inner chunk (1 vreg / feature)


def _round_up(n, m):
    return ((n + m - 1) // m) * m


def _sigmoid_from_neg(zneg):
    # zneg == -z (weights/biases pre-negated on the host).
    # exp -> EUP, reciprocal -> EUP; VALU only sees the add.
    return pl.reciprocal(1.0 + jnp.exp(zneg), approx=False)


def _neg_affine(w_row, b, inputs):
    # w_row / b are already negated: returns -(W x + b) for one output feature.
    acc = w_row[0] * inputs[0]
    for k in range(1, len(inputs)):
        acc = acc + w_row[k] * inputs[k]
    return acc + b


def mlp_kernel(nw1_ref, nb1_ref, nw2_ref, nb2_ref, nw3_ref, nb3_ref,
               x_ref, o_ref):
    # x_ref: (8, ts, 128) block -- batch dense on (sublane, lane).
    # o_ref: (1, ts, 128) block.
    # Hoist all 87 parameter scalars out of the chunk loop: one SMEM read per
    # grid step, loop-invariant inside the fori_loop below.
    nw1 = [[nw1_ref[j, k] for k in range(IN)] for j in range(H1)]
    nb1 = [nb1_ref[j] for j in range(H1)]
    nw2 = [[nw2_ref[j, k] for k in range(H1)] for j in range(H2)]
    nb2 = [nb2_ref[j] for j in range(H2)]
    nw3 = [nw3_ref[0, k] for k in range(H2)]
    nb3 = nb3_ref[0]

    ts = x_ref.shape[1]           # static (block shape)
    n_chunks = ts // CHUNK

    def chunk_body(c, carry):
        r = pl.multiple_of(c * CHUNK, CHUNK)
        xs = [x_ref[k, pl.ds(r, CHUNK), :] for k in range(IN)]
        h1 = [_sigmoid_from_neg(_neg_affine(nw1[j], nb1[j], xs))
              for j in range(H1)]
        h2 = [_sigmoid_from_neg(_neg_affine(nw2[j], nb2[j], h1))
              for j in range(H2)]
        o_ref[0, pl.ds(r, CHUNK), :] = _sigmoid_from_neg(
            _neg_affine(nw3, nb3, h2))
        return carry

    lax.fori_loop(0, n_chunks, chunk_body, 0)


def mlp_forward(x, params, *, max_block=MAX_BLOCK):
    """x: (B, 8) float32 -> (B, 1) float32 (matches the PyTorch Model)."""
    B = x.shape[0]

    # ---- batch tile: as large as possible (amortise per-step overhead), but
    # at least 2 grid steps when the batch allows it (v7x megacore).
    b_aligned = _round_up(B, MIN_BLOCK)
    if b_aligned <= max_block:
        if b_aligned >= 2 * MIN_BLOCK:
            bb = _round_up(b_aligned // 2, MIN_BLOCK)
        else:
            bb = b_aligned
    else:
        bb = max_block
    B_pad = _round_up(B, bb)
    if B_pad != B:
        x = jnp.pad(x, ((0, B_pad - B), (0, 0)))

    rows = B_pad // LANE          # sublane rows of the whole (padded) batch
    ts = bb // LANE               # sublane rows per grid step
    grid = (B_pad // bb,)

    # (B_pad, 8) -> (8, B_pad) -> (8, rows, 128): batch on sublanes + lanes.
    # TODO(synk): accept feature-major (8, B) input from the producer to drop
    # this extra HBM read/write pass (biggest relative win on v5e).
    x3 = x.T.reshape(IN, rows, LANE)

    # Pre-negate all 87 parameters on the host so the kernel never negates the
    # streamed tensor: sigmoid(z) = reciprocal(1 + exp(-z)) with -z direct.
    neg_params = tuple(-p for p in params)

    smem = pl.BlockSpec(memory_space=pltpu.MemorySpace.SMEM)
    out3 = pl.pallas_call(
        mlp_kernel,
        out_shape=jax.ShapeDtypeStruct((OUT, rows, LANE), jnp.float32),
        grid=grid,
        in_specs=[smem, smem, smem, smem, smem, smem,                  # params (resident)
                  pl.BlockSpec((IN, ts, LANE), lambda i: (0, i, 0))],  # x (streamed)
        out_specs=pl.BlockSpec((OUT, ts, LANE), lambda i: (0, i, 0)),
        compiler_params=pltpu.CompilerParams(
            dimension_semantics=("parallel",),
        ),
    )(*neg_params, x3)

    return out3.reshape(B_pad)[:B].reshape(B, 1)


def init_params(key):
    """torch.nn.Linear-style init: W (out,in), b (out,), uniform +/-1/sqrt(in)."""
    sizes = [(IN, H1), (H1, H2), (H2, OUT)]
    params = []
    for fan_in, fan_out in sizes:
        key, kw, kb = jax.random.split(key, 3)
        bound = 1.0 / (fan_in ** 0.5)
        w = jax.random.uniform(kw, (fan_out, fan_in), jnp.float32, -bound, bound)
        b = jax.random.uniform(kb, (fan_out,), jnp.float32, -bound, bound)
        params += [w, b]
    return tuple(params)


def reference_forward(x, params):
    w1, b1, w2, b2, w3, b3 = params
    h1 = jax.nn.sigmoid(x @ w1.T + b1)
    h2 = jax.nn.sigmoid(h1 @ w2.T + b2)
    return jax.nn.sigmoid(h2 @ w3.T + b3)


if __name__ == "__main__":
    key = jax.random.PRNGKey(0)
    key, kx1, kx2 = jax.random.split(key, 3)
    params = init_params(key)

    # Small test matching the module's natural shape (batch=8, features=8).
    x_small = jax.random.normal(kx1, (8, IN), jnp.float32)
    out_small = mlp_forward(x_small, params)
    jax.block_until_ready(out_small)
    ref_small = reference_forward(x_small, params)
    assert out_small.shape == (8, 1)
    assert jnp.allclose(out_small, ref_small, atol=2e-3, rtol=2e-3), float(
        jnp.max(jnp.abs(out_small - ref_small)))

    # Second test exercising multi-grid-step + multi-chunk + padding paths.
    x_big = jax.random.normal(kx2, (3000, IN), jnp.float32)
    out_big = mlp_forward(x_big, params)
    jax.block_until_ready(out_big)
    ref_big = reference_forward(x_big, params)
    assert out_big.shape == (3000, 1)
    assert jnp.allclose(out_big, ref_big, atol=2e-3, rtol=2e-3), float(
        jnp.max(jnp.abs(out_big - ref_big)))

    print("KERNEL_OK")
</pallas_src>

<mosaic_0001>
module attributes {stable_mosaic.version = 11 : i64} {
  func.func @mlp_kernel(%arg0: i32, %arg1: memref<6x8xf32, #tpu.memory_space<smem>>, %arg2: memref<6xf32, #tpu.memory_space<smem>>, %arg3: memref<4x6xf32, #tpu.memory_space<smem>>, %arg4: memref<4xf32, #tpu.memory_space<smem>>, %arg5: memref<1x4xf32, #tpu.memory_space<smem>>, %arg6: memref<1xf32, #tpu.memory_space<smem>>, %arg7: memref<8x8x128xf32, #tpu.memory_space<vmem>>, %arg8: memref<1x8x128xf32, #tpu.memory_space<vmem>>) attributes {dimension_semantics = [#tpu.dimension_semantics<parallel>], iteration_bounds = array<i64: 1>, scalar_prefetch = 0 : i64, scratch_operands = 0 : i64, tpu.core_type = #tpu.core_type<tc>, window_params = [{transform_indices = @transform_0, window_bounds = array<i64: 6, 8>}, {transform_indices = @transform_1, window_bounds = array<i64: 6>}, {transform_indices = @transform_2, window_bounds = array<i64: 4, 6>}, {transform_indices = @transform_3, window_bounds = array<i64: 4>}, {transform_indices = @transform_4, window_bounds = array<i64: 1, 4>}, {transform_indices = @transform_5, window_bounds = array<i64: 1>}, {transform_indices = @transform_6, window_bounds = array<i64: 8, 8, 128>}, {transform_indices = @transform_7, window_bounds = array<i64: 1, 8, 128>}]} {
    %c0 = arith.constant 0 : index
    %c0_0 = arith.constant 0 : index
    %0 = memref.load %arg1[%c0, %c0_0] : memref<6x8xf32, #tpu.memory_space<smem>>
    %c0_1 = arith.constant 0 : index
    %c1 = arith.constant 1 : index
    %1 = memref.load %arg1[%c0_1, %c1] : memref<6x8xf32, #tpu.memory_space<smem>>
    %c0_2 = arith.constant 0 : index
    %c2 = arith.constant 2 : index
    %2 = memref.load %arg1[%c0_2, %c2] : memref<6x8xf32, #tpu.memory_space<smem>>
    %c0_3 = arith.constant 0 : index
    %c3 = arith.constant 3 : index
    %3 = memref.load %arg1[%c0_3, %c3] : memref<6x8xf32, #tpu.memory_space<smem>>
    %c0_4 = arith.constant 0 : index
    %c4 = arith.constant 4 : index
    %4 = memref.load %arg1[%c0_4, %c4] : memref<6x8xf32, #tpu.memory_space<smem>>
    %c0_5 = arith.constant 0 : index
    %c5 = arith.constant 5 : index
    %5 = memref.load %arg1[%c0_5, %c5] : memref<6x8xf32, #tpu.memory_space<smem>>
    %c0_6 = arith.constant 0 : index
    %c6 = arith.constant 6 : index
    %6 = memref.load %arg1[%c0_6, %c6] : memref<6x8xf32, #tpu.memory_space<smem>>
    %c0_7 = arith.constant 0 : index
    %c7 = arith.constant 7 : index
    %7 = memref.load %arg1[%c0_7, %c7] : memref<6x8xf32, #tpu.memory_space<smem>>
    %c1_8 = arith.constant 1 : index
    %c0_9 = arith.constant 0 : index
    %8 = memref.load %arg1[%c1_8, %c0_9] : memref<6x8xf32, #tpu.memory_space<smem>>
    %c1_10 = arith.constant 1 : index
    %c1_11 = arith.constant 1 : index
    %9 = memref.load %arg1[%c1_10, %c1_11] : memref<6x8xf32, #tpu.memory_space<smem>>
    %c1_12 = arith.constant 1 : index
    %c2_13 = arith.constant 2 : index
    %10 = memref.load %arg1[%c1_12, %c2_13] : memref<6x8xf32, #tpu.memory_space<smem>>
    %c1_14 = arith.constant 1 : index
    %c3_15 = arith.constant 3 : index
    %11 = memref.load %arg1[%c1_14, %c3_15] : memref<6x8xf32, #tpu.memory_space<smem>>
    %c1_16 = arith.constant 1 : index
    %c4_17 = arith.constant 4 : index
    %12 = memref.load %arg1[%c1_16, %c4_17] : memref<6x8xf32, #tpu.memory_space<smem>>
    %c1_18 = arith.constant 1 : index
    %c5_19 = arith.constant 5 : index
    %13 = memref.load %arg1[%c1_18, %c5_19] : memref<6x8xf32, #tpu.memory_space<smem>>
    %c1_20 = arith.constant 1 : index
    %c6_21 = arith.constant 6 : index
    %14 = memref.load %arg1[%c1_20, %c6_21] : memref<6x8xf32, #tpu.memory_space<smem>>
    %c1_22 = arith.constant 1 : index
    %c7_23 = arith.constant 7 : index
    %15 = memref.load %arg1[%c1_22, %c7_23] : memref<6x8xf32, #tpu.memory_space<smem>>
    %c2_24 = arith.constant 2 : index
    %c0_25 = arith.constant 0 : index
    %16 = memref.load %arg1[%c2_24, %c0_25] : memref<6x8xf32, #tpu.memory_space<smem>>
    %c2_26 = arith.constant 2 : index
    %c1_27 = arith.constant 1 : index
    %17 = memref.load %arg1[%c2_26, %c1_27] : memref<6x8xf32, #tpu.memory_space<smem>>
    %c2_28 = arith.constant 2 : index
    %c2_29 = arith.constant 2 : index
    %18 = memref.load %arg1[%c2_28, %c2_29] : memref<6x8xf32, #tpu.memory_space<smem>>
    %c2_30 = arith.constant 2 : index
    %c3_31 = arith.constant 3 : index
    %19 = memref.load %arg1[%c2_30, %c3_31] : memref<6x8xf32, #tpu.memory_space<smem>>
    %c2_32 = arith.constant 2 : index
    %c4_33 = arith.constant 4 : index
    %20 = memref.load %arg1[%c2_32, %c4_33] : memref<6x8xf32, #tpu.memory_space<smem>>
    %c2_34 = arith.constant 2 : index
    %c5_35 = arith.constant 5 : index
    %21 = memref.load %arg1[%c2_34, %c5_35] : memref<6x8xf32, #tpu.memory_space<smem>>
    %c2_36 = arith.constant 2 : index
    %c6_37 = arith.constant 6 : index
    %22 = memref.load %arg1[%c2_36, %c6_37] : memref<6x8xf32, #tpu.memory_space<smem>>
    %c2_38 = arith.constant 2 : index
    %c7_39 = arith.constant 7 : index
    %23 = memref.load %arg1[%c2_38, %c7_39] : memref<6x8xf32, #tpu.memory_space<smem>>
    %c3_40 = arith.constant 3 : index
    %c0_41 = arith.constant 0 : index
    %24 = memref.load %arg1[%c3_40, %c0_41] : memref<6x8xf32, #tpu.memory_space<smem>>
    %c3_42 = arith.constant 3 : index
    %c1_43 = arith.constant 1 : index
    %25 = memref.load %arg1[%c3_42, %c1_43] : memref<6x8xf32, #tpu.memory_space<smem>>
    %c3_44 = arith.constant 3 : index
    %c2_45 = arith.constant 2 : index
    %26 = memref.load %arg1[%c3_44, %c2_45] : memref<6x8xf32, #tpu.memory_space<smem>>
    %c3_46 = arith.constant 3 : index
    %c3_47 = arith.constant 3 : index
    %27 = memref.load %arg1[%c3_46, %c3_47] : memref<6x8xf32, #tpu.memory_space<smem>>
    %c3_48 = arith.constant 3 : index
    %c4_49 = arith.constant 4 : index
    %28 = memref.load %arg1[%c3_48, %c4_49] : memref<6x8xf32, #tpu.memory_space<smem>>
    %c3_50 = arith.constant 3 : index
    %c5_51 = arith.constant 5 : index
    %29 = memref.load %arg1[%c3_50, %c5_51] : memref<6x8xf32, #tpu.memory_space<smem>>
    %c3_52 = arith.constant 3 : index
    %c6_53 = arith.constant 6 : index
    %30 = memref.load %arg1[%c3_52, %c6_53] : memref<6x8xf32, #tpu.memory_space<smem>>
    %c3_54 = arith.constant 3 : index
    %c7_55 = arith.constant 7 : index
    %31 = memref.load %arg1[%c3_54, %c7_55] : memref<6x8xf32, #tpu.memory_space<smem>>
    %c4_56 = arith.constant 4 : index
    %c0_57 = arith.constant 0 : index
    %32 = memref.load %arg1[%c4_56, %c0_57] : memref<6x8xf32, #tpu.memory_space<smem>>
    %c4_58 = arith.constant 4 : index
    %c1_59 = arith.constant 1 : index
    %33 = memref.load %arg1[%c4_58, %c1_59] : memref<6x8xf32, #tpu.memory_space<smem>>
    %c4_60 = arith.constant 4 : index
    %c2_61 = arith.constant 2 : index
    %34 = memref.load %arg1[%c4_60, %c2_61] : memref<6x8xf32, #tpu.memory_space<smem>>
    %c4_62 = arith.constant 4 : index
    %c3_63 = arith.constant 3 : index
    %35 = memref.load %arg1[%c4_62, %c3_63] : memref<6x8xf32, #tpu.memory_space<smem>>
    %c4_64 = arith.constant 4 : index
    %c4_65 = arith.constant 4 : index
    %36 = memref.load %arg1[%c4_64, %c4_65] : memref<6x8xf32, #tpu.memory_space<smem>>
    %c4_66 = arith.constant 4 : index
    %c5_67 = arith.constant 5 : index
    %37 = memref.load %arg1[%c4_66, %c5_67] : memref<6x8xf32, #tpu.memory_space<smem>>
    %c4_68 = arith.constant 4 : index
    %c6_69 = arith.constant 6 : index
    %38 = memref.load %arg1[%c4_68, %c6_69] : memref<6x8xf32, #tpu.memory_space<smem>>
    %c4_70 = arith.constant 4 : index
    %c7_71 = arith.constant 7 : index
    %39 = memref.load %arg1[%c4_70, %c7_71] : memref<6x8xf32, #tpu.memory_space<smem>>
    %c5_72 = arith.constant 5 : index
    %c0_73 = arith.constant 0 : index
    %40 = memref.load %arg1[%c5_72, %c0_73] : memref<6x8xf32, #tpu.memory_space<smem>>
    %c5_74 = arith.constant 5 : index
    %c1_75 = arith.constant 1 : index
    %41 = memref.load %arg1[%c5_74, %c1_75] : memref<6x8xf32, #tpu.memory_space<smem>>
    %c5_76 = arith.constant 5 : index
    %c2_77 = arith.constant 2 : index
    %42 = memref.load %arg1[%c5_76, %c2_77] : memref<6x8xf32, #tpu.memory_space<smem>>
    %c5_78 = arith.constant 5 : index
    %c3_79 = arith.constant 3 : index
    %43 = memref.load %arg1[%c5_78, %c3_79] : memref<6x8xf32, #tpu.memory_space<smem>>
    %c5_80 = arith.constant 5 : index
    %c4_81 = arith.constant 4 : index
    %44 = memref.load %arg1[%c5_80, %c4_81] : memref<6x8xf32, #tpu.memory_space<smem>>
    %c5_82 = arith.constant 5 : index
    %c5_83 = arith.constant 5 : index
    %45 = memref.load %arg1[%c5_82, %c5_83] : memref<6x8xf32, #tpu.memory_space<smem>>
    %c5_84 = arith.constant 5 : index
    %c6_85 = arith.constant 6 : index
    %46 = memref.load %arg1[%c5_84, %c6_85] : memref<6x8xf32, #tpu.memory_space<smem>>
    %c5_86 = arith.constant 5 : index
    %c7_87 = arith.constant 7 : index
    %47 = memref.load %arg1[%c5_86, %c7_87] : memref<6x8xf32, #tpu.memory_space<smem>>
    %c0_88 = arith.constant 0 : index
    %48 = memref.load %arg2[%c0_88] : memref<6xf32, #tpu.memory_space<smem>>
    %c1_89 = arith.constant 1 : index
    %49 = memref.load %arg2[%c1_89] : memref<6xf32, #tpu.memory_space<smem>>
    %c2_90 = arith.constant 2 : index
    %50 = memref.load %arg2[%c2_90] : memref<6xf32, #tpu.memory_space<smem>>
    %c3_91 = arith.constant 3 : index
    %51 = memref.load %arg2[%c3_91] : memref<6xf32, #tpu.memory_space<smem>>
    %c4_92 = arith.constant 4 : index
    %52 = memref.load %arg2[%c4_92] : memref<6xf32, #tpu.memory_space<smem>>
    %c5_93 = arith.constant 5 : index
    %53 = memref.load %arg2[%c5_93] : memref<6xf32, #tpu.memory_space<smem>>
    %c0_94 = arith.constant 0 : index
    %c0_95 = arith.constant 0 : index
    %54 = memref.load %arg3[%c0_94, %c0_95] : memref<4x6xf32, #tpu.memory_space<smem>>
    %c0_96 = arith.constant 0 : index
    %c1_97 = arith.constant 1 : index
    %55 = memref.load %arg3[%c0_96, %c1_97] : memref<4x6xf32, #tpu.memory_space<smem>>
    %c0_98 = arith.constant 0 : index
    %c2_99 = arith.constant 2 : index
    %56 = memref.load %arg3[%c0_98, %c2_99] : memref<4x6xf32, #tpu.memory_space<smem>>
    %c0_100 = arith.constant 0 : index
    %c3_101 = arith.constant 3 : index
    %57 = memref.load %arg3[%c0_100, %c3_101] : memref<4x6xf32, #tpu.memory_space<smem>>
    %c0_102 = arith.constant 0 : index
    %c4_103 = arith.constant 4 : index
    %58 = memref.load %arg3[%c0_102, %c4_103] : memref<4x6xf32, #tpu.memory_space<smem>>
    %c0_104 = arith.constant 0 : index
    %c5_105 = arith.constant 5 : index
    %59 = memref.load %arg3[%c0_104, %c5_105] : memref<4x6xf32, #tpu.memory_space<smem>>
    %c1_106 = arith.constant 1 : index
    %c0_107 = arith.constant 0 : index
    %60 = memref.load %arg3[%c1_106, %c0_107] : memref<4x6xf32, #tpu.memory_space<smem>>
    %c1_108 = arith.constant 1 : index
    %c1_109 = arith.constant 1 : index
    %61 = memref.load %arg3[%c1_108, %c1_109] : memref<4x6xf32, #tpu.memory_space<smem>>
    %c1_110 = arith.constant 1 : index
    %c2_111 = arith.constant 2 : index
    %62 = memref.load %arg3[%c1_110, %c2_111] : memref<4x6xf32, #tpu.memory_space<smem>>
    %c1_112 = arith.constant 1 : index
    %c3_113 = arith.constant 3 : index
    %63 = memref.load %arg3[%c1_112, %c3_113] : memref<4x6xf32, #tpu.memory_space<smem>>
    %c1_114 = arith.constant 1 : index
    %c4_115 = arith.constant 4 : index
    %64 = memref.load %arg3[%c1_114, %c4_115] : memref<4x6xf32, #tpu.memory_space<smem>>
    %c1_116 = arith.constant 1 : index
    %c5_117 = arith.constant 5 : index
    %65 = memref.load %arg3[%c1_116, %c5_117] : memref<4x6xf32, #tpu.memory_space<smem>>
    %c2_118 = arith.constant 2 : index
    %c0_119 = arith.constant 0 : index
    %66 = memref.load %arg3[%c2_118, %c0_119] : memref<4x6xf32, #tpu.memory_space<smem>>
    %c2_120 = arith.constant 2 : index
    %c1_121 = arith.constant 1 : index
    %67 = memref.load %arg3[%c2_120, %c1_121] : memref<4x6xf32, #tpu.memory_space<smem>>
    %c2_122 = arith.constant 2 : index
    %c2_123 = arith.constant 2 : index
    %68 = memref.load %arg3[%c2_122, %c2_123] : memref<4x6xf32, #tpu.memory_space<smem>>
    %c2_124 = arith.constant 2 : index
    %c3_125 = arith.constant 3 : index
    %69 = memref.load %arg3[%c2_124, %c3_125] : memref<4x6xf32, #tpu.memory_space<smem>>
    %c2_126 = arith.constant 2 : index
    %c4_127 = arith.constant 4 : index
    %70 = memref.load %arg3[%c2_126, %c4_127] : memref<4x6xf32, #tpu.memory_space<smem>>
    %c2_128 = arith.constant 2 : index
    %c5_129 = arith.constant 5 : index
    %71 = memref.load %arg3[%c2_128, %c5_129] : memref<4x6xf32, #tpu.memory_space<smem>>
    %c3_130 = arith.constant 3 : index
    %c0_131 = arith.constant 0 : index
    %72 = memref.load %arg3[%c3_130, %c0_131] : memref<4x6xf32, #tpu.memory_space<smem>>
    %c3_132 = arith.constant 3 : index
    %c1_133 = arith.constant 1 : index
    %73 = memref.load %arg3[%c3_132, %c1_133] : memref<4x6xf32, #tpu.memory_space<smem>>
    %c3_134 = arith.constant 3 : index
    %c2_135 = arith.constant 2 : index
    %74 = memref.load %arg3[%c3_134, %c2_135] : memref<4x6xf32, #tpu.memory_space<smem>>
    %c3_136 = arith.constant 3 : index
    %c3_137 = arith.constant 3 : index
    %75 = memref.load %arg3[%c3_136, %c3_137] : memref<4x6xf32, #tpu.memory_space<smem>>
    %c3_138 = arith.constant 3 : index
    %c4_139 = arith.constant 4 : index
    %76 = memref.load %arg3[%c3_138, %c4_139] : memref<4x6xf32, #tpu.memory_space<smem>>
    %c3_140 = arith.constant 3 : index
    %c5_141 = arith.constant 5 : index
    %77 = memref.load %arg3[%c3_140, %c5_141] : memref<4x6xf32, #tpu.memory_space<smem>>
    %c0_142 = arith.constant 0 : index
    %78 = memref.load %arg4[%c0_142] : memref<4xf32, #tpu.memory_space<smem>>
    %c1_143 = arith.constant 1 : index
    %79 = memref.load %arg4[%c1_143] : memref<4xf32, #tpu.memory_space<smem>>
    %c2_144 = arith.constant 2 : index
    %80 = memref.load %arg4[%c2_144] : memref<4xf32, #tpu.memory_space<smem>>
    %c3_145 = arith.constant 3 : index
    %81 = memref.load %arg4[%c3_145] : memref<4xf32, #tpu.memory_space<smem>>
    %c0_146 = arith.constant 0 : index
    %c0_147 = arith.constant 0 : index
    %82 = memref.load %arg5[%c0_146, %c0_147] : memref<1x4xf32, #tpu.memory_space<smem>>
    %c0_148 = arith.constant 0 : index
    %c1_149 = arith.constant 1 : index
    %83 = memref.load %arg5[%c0_148, %c1_149] : memref<1x4xf32, #tpu.memory_space<smem>>
    %c0_150 = arith.constant 0 : index
    %c2_151 = arith.constant 2 : index
    %84 = memref.load %arg5[%c0_150, %c2_151] : memref<1x4xf32, #tpu.memory_space<smem>>
    %c0_152 = arith.constant 0 : index
    %c3_153 = arith.constant 3 : index
    %85 = memref.load %arg5[%c0_152, %c3_153] : memref<1x4xf32, #tpu.memory_space<smem>>
    %c0_154 = arith.constant 0 : index
    %86 = memref.load %arg6[%c0_154] : memref<1xf32, #tpu.memory_space<smem>>
    %c0_i32 = arith.constant 0 : i32
    %c8_i32 = arith.constant 8 : i32
    %87 = arith.muli %c0_i32, %c8_i32 : i32
    %88 = tpu.assume_multiple %87, 8 : i32
    %c0_155 = arith.constant 0 : index
    %89 = arith.index_cast %88 : i32 to index
    %c0_156 = arith.constant 0 : index
    %90 = vector.load %arg7[%c0_155, %89, %c0_156] : memref<8x8x128xf32, #tpu.memory_space<vmem>>, vector<1x8x128xf32>
    %91 = vector.shape_cast %90 : vector<1x8x128xf32> to vector<8x128xf32>
    %c1_157 = arith.constant 1 : index
    %92 = arith.index_cast %88 : i32 to index
    %c0_158 = arith.constant 0 : index
    %93 = vector.load %arg7[%c1_157, %92, %c0_158] : memref<8x8x128xf32, #tpu.memory_space<vmem>>, vector<1x8x128xf32>
    %94 = vector.shape_cast %93 : vector<1x8x128xf32> to vector<8x128xf32>
    %c2_159 = arith.constant 2 : index
    %95 = arith.index_cast %88 : i32 to index
    %c0_160 = arith.constant 0 : index
    %96 = vector.load %arg7[%c2_159, %95, %c0_160] : memref<8x8x128xf32, #tpu.memory_space<vmem>>, vector<1x8x128xf32>
    %97 = vector.shape_cast %96 : vector<1x8x128xf32> to vector<8x128xf32>
    %c3_161 = arith.constant 3 : index
    %98 = arith.index_cast %88 : i32 to index
    %c0_162 = arith.constant 0 : index
    %99 = vector.load %arg7[%c3_161, %98, %c0_162] : memref<8x8x128xf32, #tpu.memory_space<vmem>>, vector<1x8x128xf32>
    %100 = vector.shape_cast %99 : vector<1x8x128xf32> to vector<8x128xf32>
    %c4_163 = arith.constant 4 : index
    %101 = arith.index_cast %88 : i32 to index
    %c0_164 = arith.constant 0 : index
    %102 = vector.load %arg7[%c4_163, %101, %c0_164] : memref<8x8x128xf32, #tpu.memory_space<vmem>>, vector<1x8x128xf32>
    %103 = vector.shape_cast %102 : vector<1x8x128xf32> to vector<8x128xf32>
    %c5_165 = arith.constant 5 : index
    %104 = arith.index_cast %88 : i32 to index
    %c0_166 = arith.constant 0 : index
    %105 = vector.load %arg7[%c5_165, %104, %c0_166] : memref<8x8x128xf32, #tpu.memory_space<vmem>>, vector<1x8x128xf32>
    %106 = vector.shape_cast %105 : vector<1x8x128xf32> to vector<8x128xf32>
    %c6_167 = arith.constant 6 : index
    %107 = arith.index_cast %88 : i32 to index
    %c0_168 = arith.constant 0 : index
    %108 = vector.load %arg7[%c6_167, %107, %c0_168] : memref<8x8x128xf32, #tpu.memory_space<vmem>>, vector<1x8x128xf32>
    %109 = vector.shape_cast %108 : vector<1x8x128xf32> to vector<8x128xf32>
    %c7_169 = arith.constant 7 : index
    %110 = arith.index_cast %88 : i32 to index
    %c0_170 = arith.constant 0 : index
    %111 = vector.load %arg7[%c7_169, %110, %c0_170] : memref<8x8x128xf32, #tpu.memory_space<vmem>>, vector<1x8x128xf32>
    %112 = vector.shape_cast %111 : vector<1x8x128xf32> to vector<8x128xf32>
    %113 = vector.broadcast %0 : f32 to vector<8x128xf32>
    %114 = arith.mulf %113, %91 : vector<8x128xf32>
    %115 = vector.broadcast %1 : f32 to vector<8x128xf32>
    %116 = arith.mulf %115, %94 : vector<8x128xf32>
    %117 = arith.addf %114, %116 : vector<8x128xf32>
    %118 = vector.broadcast %2 : f32 to vector<8x128xf32>
    %119 = arith.mulf %118, %97 : vector<8x128xf32>
    %120 = arith.addf %117, %119 : vector<8x128xf32>
    %121 = vector.broadcast %3 : f32 to vector<8x128xf32>
    %122 = arith.mulf %121, %100 : vector<8x128xf32>
    %123 = arith.addf %120, %122 : vector<8x128xf32>
    %124 = vector.broadcast %4 : f32 to vector<8x128xf32>
    %125 = arith.mulf %124, %103 : vector<8x128xf32>
    %126 = arith.addf %123, %125 : vector<8x128xf32>
    %127 = vector.broadcast %5 : f32 to vector<8x128xf32>
    %128 = arith.mulf %127, %106 : vector<8x128xf32>
    %129 = arith.addf %126, %128 : vector<8x128xf32>
    %130 = vector.broadcast %6 : f32 to vector<8x128xf32>
    %131 = arith.mulf %130, %109 : vector<8x128xf32>
    %132 = arith.addf %129, %131 : vector<8x128xf32>
    %133 = vector.broadcast %7 : f32 to vector<8x128xf32>
    %134 = arith.mulf %133, %112 : vector<8x128xf32>
    %135 = arith.addf %132, %134 : vector<8x128xf32>
    %136 = vector.broadcast %48 : f32 to vector<8x128xf32>
    %137 = arith.addf %135, %136 : vector<8x128xf32>
    %138 = math.exp %137 : vector<8x128xf32>
    %cst = arith.constant 1.000000e+00 : f32
    %139 = vector.broadcast %cst : f32 to vector<8x128xf32>
    %140 = arith.addf %139, %138 : vector<8x128xf32>
    %141 = tpu.reciprocal %140 : vector<8x128xf32> -> vector<8x128xf32>
    %142 = vector.broadcast %8 : f32 to vector<8x128xf32>
    %143 = arith.mulf %142, %91 : vector<8x128xf32>
    %144 = vector.broadcast %9 : f32 to vector<8x128xf32>
    %145 = arith.mulf %144, %94 : vector<8x128xf32>
    %146 = arith.addf %143, %145 : vector<8x128xf32>
    %147 = vector.broadcast %10 : f32 to vector<8x128xf32>
    %148 = arith.mulf %147, %97 : vector<8x128xf32>
    %149 = arith.addf %146, %148 : vector<8x128xf32>
    %150 = vector.broadcast %11 : f32 to vector<8x128xf32>
    %151 = arith.mulf %150, %100 : vector<8x128xf32>
    %152 = arith.addf %149, %151 : vector<8x128xf32>
    %153 = vector.broadcast %12 : f32 to vector<8x128xf32>
    %154 = arith.mulf %153, %103 : vector<8x128xf32>
    %155 = arith.addf %152, %154 : vector<8x128xf32>
    %156 = vector.broadcast %13 : f32 to vector<8x128xf32>
    %157 = arith.mulf %156, %106 : vector<8x128xf32>
    %158 = arith.addf %155, %157 : vector<8x128xf32>
    %159 = vector.broadcast %14 : f32 to vector<8x128xf32>
    %160 = arith.mulf %159, %109 : vector<8x128xf32>
    %161 = arith.addf %158, %160 : vector<8x128xf32>
    %162 = vector.broadcast %15 : f32 to vector<8x128xf32>
    %163 = arith.mulf %162, %112 : vector<8x128xf32>
    %164 = arith.addf %161, %163 : vector<8x128xf32>
    %165 = vector.broadcast %49 : f32 to vector<8x128xf32>
    %166 = arith.addf %164, %165 : vector<8x128xf32>
    %167 = math.exp %166 : vector<8x128xf32>
    %cst_171 = arith.constant 1.000000e+00 : f32
    %168 = vector.broadcast %cst_171 : f32 to vector<8x128xf32>
    %169 = arith.addf %168, %167 : vector<8x128xf32>
    %170 = tpu.reciprocal %169 : vector<8x128xf32> -> vector<8x128xf32>
    %171 = vector.broadcast %16 : f32 to vector<8x128xf32>
    %172 = arith.mulf %171, %91 : vector<8x128xf32>
    %173 = vector.broadcast %17 : f32 to vector<8x128xf32>
    %174 = arith.mulf %173, %94 : vector<8x128xf32>
    %175 = arith.addf %172, %174 : vector<8x128xf32>
    %176 = vector.broadcast %18 : f32 to vector<8x128xf32>
    %177 = arith.mulf %176, %97 : vector<8x128xf32>
    %178 = arith.addf %175, %177 : vector<8x128xf32>
    %179 = vector.broadcast %19 : f32 to vector<8x128xf32>
    %180 = arith.mulf %179, %100 : vector<8x128xf32>
    %181 = arith.addf %178, %180 : vector<8x128xf32>
    %182 = vector.broadcast %20 : f32 to vector<8x128xf32>
    %183 = arith.mulf %182, %103 : vector<8x128xf32>
    %184 = arith.addf %181, %183 : vector<8x128xf32>
    %185 = vector.broadcast %21 : f32 to vector<8x128xf32>
    %186 = arith.mulf %185, %106 : vector<8x128xf32>
    %187 = arith.addf %184, %186 : vector<8x128xf32>
    %188 = vector.broadcast %22 : f32 to vector<8x128xf32>
    %189 = arith.mulf %188, %109 : vector<8x128xf32>
    %190 = arith.addf %187, %189 : vector<8x128xf32>
    %191 = vector.broadcast %23 : f32 to vector<8x128xf32>
    %192 = arith.mulf %191, %112 : vector<8x128xf32>
    %193 = arith.addf %190, %192 : vector<8x128xf32>
    %194 = vector.broadcast %50 : f32 to vector<8x128xf32>
    %195 = arith.addf %193, %194 : vector<8x128xf32>
    %196 = math.exp %195 : vector<8x128xf32>
    %cst_172 = arith.constant 1.000000e+00 : f32
    %197 = vector.broadcast %cst_172 : f32 to vector<8x128xf32>
    %198 = arith.addf %197, %196 : vector<8x128xf32>
    %199 = tpu.reciprocal %198 : vector<8x128xf32> -> vector<8x128xf32>
    %200 = vector.broadcast %24 : f32 to vector<8x128xf32>
    %201 = arith.mulf %200, %91 : vector<8x128xf32>
    %202 = vector.broadcast %25 : f32 to vector<8x128xf32>
    %203 = arith.mulf %202, %94 : vector<8x128xf32>
    %204 = arith.addf %201, %203 : vector<8x128xf32>
    %205 = vector.broadcast %26 : f32 to vector<8x128xf32>
    %206 = arith.mulf %205, %97 : vector<8x128xf32>
    %207 = arith.addf %204, %206 : vector<8x128xf32>
    %208 = vector.broadcast %27 : f32 to vector<8x128xf32>
    %209 = arith.mulf %208, %100 : vector<8x128xf32>
    %210 = arith.addf %207, %209 : vector<8x128xf32>
    %211 = vector.broadcast %28 : f32 to vector<8x128xf32>
    %212 = arith.mulf %211, %103 : vector<8x128xf32>
    %213 = arith.addf %210, %212 : vector<8x128xf32>
    %214 = vector.broadcast %29 : f32 to vector<8x128xf32>
    %215 = arith.mulf %214, %106 : vector<8x128xf32>
    %216 = arith.addf %213, %215 : vector<8x128xf32>
    %217 = vector.broadcast %30 : f32 to vector<8x128xf32>
    %218 = arith.mulf %217, %109 : vector<8x128xf32>
    %219 = arith.addf %216, %218 : vector<8x128xf32>
    %220 = vector.broadcast %31 : f32 to vector<8x128xf32>
    %221 = arith.mulf %220, %112 : vector<8x128xf32>
    %222 = arith.addf %219, %221 : vector<8x128xf32>
    %223 = vector.broadcast %51 : f32 to vector<8x128xf32>
    %224 = arith.addf %222, %223 : vector<8x128xf32>
    %225 = math.exp %224 : vector<8x128xf32>
    %cst_173 = arith.constant 1.000000e+00 : f32
    %226 = vector.broadcast %cst_173 : f32 to vector<8x128xf32>
    %227 = arith.addf %226, %225 : vector<8x128xf32>
    %228 = tpu.reciprocal %227 : vector<8x128xf32> -> vector<8x128xf32>
    %229 = vector.broadcast %32 : f32 to vector<8x128xf32>
    %230 = arith.mulf %229, %91 : vector<8x128xf32>
    %231 = vector.broadcast %33 : f32 to vector<8x128xf32>
    %232 = arith.mulf %231, %94 : vector<8x128xf32>
    %233 = arith.addf %230, %232 : vector<8x128xf32>
    %234 = vector.broadcast %34 : f32 to vector<8x128xf32>
    %235 = arith.mulf %234, %97 : vector<8x128xf32>
    %236 = arith.addf %233, %235 : vector<8x128xf32>
    %237 = vector.broadcast %35 : f32 to vector<8x128xf32>
    %238 = arith.mulf %237, %100 : vector<8x128xf32>
    %239 = arith.addf %236, %238 : vector<8x128xf32>
    %240 = vector.broadcast %36 : f32 to vector<8x128xf32>
    %241 = arith.mulf %240, %103 : vector<8x128xf32>
    %242 = arith.addf %239, %241 : vector<8x128xf32>
    %243 = vector.broadcast %37 : f32 to vector<8x128xf32>
    %244 = arith.mulf %243, %106 : vector<8x128xf32>
    %245 = arith.addf %242, %244 : vector<8x128xf32>
    %246 = vector.broadcast %38 : f32 to vector<8x128xf32>
    %247 = arith.mulf %246, %109 : vector<8x128xf32>
    %248 = arith.addf %245, %247 : vector<8x128xf32>
    %249 = vector.broadcast %39 : f32 to vector<8x128xf32>
    %250 = arith.mulf %249, %112 : vector<8x128xf32>
    %251 = arith.addf %248, %250 : vector<8x128xf32>
    %252 = vector.broadcast %52 : f32 to vector<8x128xf32>
    %253 = arith.addf %251, %252 : vector<8x128xf32>
    %254 = math.exp %253 : vector<8x128xf32>
    %cst_174 = arith.constant 1.000000e+00 : f32
    %255 = vector.broadcast %cst_174 : f32 to vector<8x128xf32>
    %256 = arith.addf %255, %254 : vector<8x128xf32>
    %257 = tpu.reciprocal %256 : vector<8x128xf32> -> vector<8x128xf32>
    %258 = vector.broadcast %40 : f32 to vector<8x128xf32>
    %259 = arith.mulf %258, %91 : vector<8x128xf32>
    %260 = vector.broadcast %41 : f32 to vector<8x128xf32>
    %261 = arith.mulf %260, %94 : vector<8x128xf32>
    %262 = arith.addf %259, %261 : vector<8x128xf32>
    %263 = vector.broadcast %42 : f32 to vector<8x128xf32>
    %264 = arith.mulf %263, %97 : vector<8x128xf32>
    %265 = arith.addf %262, %264 : vector<8x128xf32>
    %266 = vector.broadcast %43 : f32 to vector<8x128xf32>
    %267 = arith.mulf %266, %100 : vector<8x128xf32>
    %268 = arith.addf %265, %267 : vector<8x128xf32>
    %269 = vector.broadcast %44 : f32 to vector<8x128xf32>
    %270 = arith.mulf %269, %103 : vector<8x128xf32>
    %271 = arith.addf %268, %270 : vector<8x128xf32>
    %272 = vector.broadcast %45 : f32 to vector<8x128xf32>
    %273 = arith.mulf %272, %106 : vector<8x128xf32>
    %274 = arith.addf %271, %273 : vector<8x128xf32>
    %275 = vector.broadcast %46 : f32 to vector<8x128xf32>
    %276 = arith.mulf %275, %109 : vector<8x128xf32>
    %277 = arith.addf %274, %276 : vector<8x128xf32>
    %278 = vector.broadcast %47 : f32 to vector<8x128xf32>
    %279 = arith.mulf %278, %112 : vector<8x128xf32>
    %280 = arith.addf %277, %279 : vector<8x128xf32>
    %281 = vector.broadcast %53 : f32 to vector<8x128xf32>
    %282 = arith.addf %280, %281 : vector<8x128xf32>
    %283 = math.exp %282 : vector<8x128xf32>
    %cst_175 = arith.constant 1.000000e+00 : f32
    %284 = vector.broadcast %cst_175 : f32 to vector<8x128xf32>
    %285 = arith.addf %284, %283 : vector<8x128xf32>
    %286 = tpu.reciprocal %285 : vector<8x128xf32> -> vector<8x128xf32>
    %287 = vector.broadcast %54 : f32 to vector<8x128xf32>
    %288 = arith.mulf %287, %141 : vector<8x128xf32>
    %289 = vector.broadcast %55 : f32 to vector<8x128xf32>
    %290 = arith.mulf %289, %170 : vector<8x128xf32>
    %291 = arith.addf %288, %290 : vector<8x128xf32>
    %292 = vector.broadcast %56 : f32 to vector<8x128xf32>
    %293 = arith.mulf %292, %199 : vector<8x128xf32>
    %294 = arith.addf %291, %293 : vector<8x128xf32>
    %295 = vector.broadcast %57 : f32 to vector<8x128xf32>
    %296 = arith.mulf %295, %228 : vector<8x128xf32>
    %297 = arith.addf %294, %296 : vector<8x128xf32>
    %298 = vector.broadcast %58 : f32 to vector<8x128xf32>
    %299 = arith.mulf %298, %257 : vector<8x128xf32>
    %300 = arith.addf %297, %299 : vector<8x128xf32>
    %301 = vector.broadcast %59 : f32 to vector<8x128xf32>
    %302 = arith.mulf %301, %286 : vector<8x128xf32>
    %303 = arith.addf %300, %302 : vector<8x128xf32>
    %304 = vector.broadcast %78 : f32 to vector<8x128xf32>
    %305 = arith.addf %303, %304 : vector<8x128xf32>
    %306 = math.exp %305 : vector<8x128xf32>
    %cst_176 = arith.constant 1.000000e+00 : f32
    %307 = vector.broadcast %cst_176 : f32 to vector<8x128xf32>
    %308 = arith.addf %307, %306 : vector<8x128xf32>
    %309 = tpu.reciprocal %308 : vector<8x128xf32> -> vector<8x128xf32>
    %310 = vector.broadcast %60 : f32 to vector<8x128xf32>
    %311 = arith.mulf %310, %141 : vector<8x128xf32>
    %312 = vector.broadcast %61 : f32 to vector<8x128xf32>
    %313 = arith.mulf %312, %170 : vector<8x128xf32>
    %314 = arith.addf %311, %313 : vector<8x128xf32>
    %315 = vector.broadcast %62 : f32 to vector<8x128xf32>
    %316 = arith.mulf %315, %199 : vector<8x128xf32>
    %317 = arith.addf %314, %316 : vector<8x128xf32>
    %318 = vector.broadcast %63 : f32 to vector<8x128xf32>
    %319 = arith.mulf %318, %228 : vector<8x128xf32>
    %320 = arith.addf %317, %319 : vector<8x128xf32>
    %321 = vector.broadcast %64 : f32 to vector<8x128xf32>
    %322 = arith.mulf %321, %257 : vector<8x128xf32>
    %323 = arith.addf %320, %322 : vector<8x128xf32>
    %324 = vector.broadcast %65 : f32 to vector<8x128xf32>
    %325 = arith.mulf %324, %286 : vector<8x128xf32>
    %326 = arith.addf %323, %325 : vector<8x128xf32>
    %327 = vector.broadcast %79 : f32 to vector<8x128xf32>
    %328 = arith.addf %326, %327 : vector<8x128xf32>
    %329 = math.exp %328 : vector<8x128xf32>
    %cst_177 = arith.constant 1.000000e+00 : f32
    %330 = vector.broadcast %cst_177 : f32 to vector<8x128xf32>
    %331 = arith.addf %330, %329 : vector<8x128xf32>
    %332 = tpu.reciprocal %331 : vector<8x128xf32> -> vector<8x128xf32>
    %333 = vector.broadcast %66 : f32 to vector<8x128xf32>
    %334 = arith.mulf %333, %141 : vector<8x128xf32>
    %335 = vector.broadcast %67 : f32 to vector<8x128xf32>
    %336 = arith.mulf %335, %170 : vector<8x128xf32>
    %337 = arith.addf %334, %336 : vector<8x128xf32>
    %338 = vector.broadcast %68 : f32 to vector<8x128xf32>
    %339 = arith.mulf %338, %199 : vector<8x128xf32>
    %340 = arith.addf %337, %339 : vector<8x128xf32>
    %341 = vector.broadcast %69 : f32 to vector<8x128xf32>
    %342 = arith.mulf %341, %228 : vector<8x128xf32>
    %343 = arith.addf %340, %342 : vector<8x128xf32>
    %344 = vector.broadcast %70 : f32 to vector<8x128xf32>
    %345 = arith.mulf %344, %257 : vector<8x128xf32>
    %346 = arith.addf %343, %345 : vector<8x128xf32>
    %347 = vector.broadcast %71 : f32 to vector<8x128xf32>
    %348 = arith.mulf %347, %286 : vector<8x128xf32>
    %349 = arith.addf %346, %348 : vector<8x128xf32>
    %350 = vector.broadcast %80 : f32 to vector<8x128xf32>
    %351 = arith.addf %349, %350 : vector<8x128xf32>
    %352 = math.exp %351 : vector<8x128xf32>
    %cst_178 = arith.constant 1.000000e+00 : f32
    %353 = vector.broadcast %cst_178 : f32 to vector<8x128xf32>
    %354 = arith.addf %353, %352 : vector<8x128xf32>
    %355 = tpu.reciprocal %354 : vector<8x128xf32> -> vector<8x128xf32>
    %356 = vector.broadcast %72 : f32 to vector<8x128xf32>
    %357 = arith.mulf %356, %141 : vector<8x128xf32>
    %358 = vector.broadcast %73 : f32 to vector<8x128xf32>
    %359 = arith.mulf %358, %170 : vector<8x128xf32>
    %360 = arith.addf %357, %359 : vector<8x128xf32>
    %361 = vector.broadcast %74 : f32 to vector<8x128xf32>
    %362 = arith.mulf %361, %199 : vector<8x128xf32>
    %363 = arith.addf %360, %362 : vector<8x128xf32>
    %364 = vector.broadcast %75 : f32 to vector<8x128xf32>
    %365 = arith.mulf %364, %228 : vector<8x128xf32>
    %366 = arith.addf %363, %365 : vector<8x128xf32>
    %367 = vector.broadcast %76 : f32 to vector<8x128xf32>
    %368 = arith.mulf %367, %257 : vector<8x128xf32>
    %369 = arith.addf %366, %368 : vector<8x128xf32>
    %370 = vector.broadcast %77 : f32 to vector<8x128xf32>
    %371 = arith.mulf %370, %286 : vector<8x128xf32>
    %372 = arith.addf %369, %371 : vector<8x128xf32>
    %373 = vector.broadcast %81 : f32 to vector<8x128xf32>
    %374 = arith.addf %372, %373 : vector<8x128xf32>
    %375 = math.exp %374 : vector<8x128xf32>
    %cst_179 = arith.constant 1.000000e+00 : f32
    %376 = vector.broadcast %cst_179 : f32 to vector<8x128xf32>
    %377 = arith.addf %376, %375 : vector<8x128xf32>
    %378 = tpu.reciprocal %377 : vector<8x128xf32> -> vector<8x128xf32>
    %379 = vector.broadcast %82 : f32 to vector<8x128xf32>
    %380 = arith.mulf %379, %309 : vector<8x128xf32>
    %381 = vector.broadcast %83 : f32 to vector<8x128xf32>
    %382 = arith.mulf %381, %332 : vector<8x128xf32>
    %383 = arith.addf %380, %382 : vector<8x128xf32>
    %384 = vector.broadcast %84 : f32 to vector<8x128xf32>
    %385 = arith.mulf %384, %355 : vector<8x128xf32>
    %386 = arith.addf %383, %385 : vector<8x128xf32>
    %387 = vector.broadcast %85 : f32 to vector<8x128xf32>
    %388 = arith.mulf %387, %378 : vector<8x128xf32>
    %389 = arith.addf %386, %388 : vector<8x128xf32>
    %390 = vector.broadcast %86 : f32 to vector<8x128xf32>
    %391 = arith.addf %389, %390 : vector<8x128xf32>
    %392 = math.exp %391 : vector<8x128xf32>
    %cst_180 = arith.constant 1.000000e+00 : f32
    %393 = vector.broadcast %cst_180 : f32 to vector<8x128xf32>
    %394 = arith.addf %393, %392 : vector<8x128xf32>
    %395 = tpu.reciprocal %394 : vector<8x128xf32> -> vector<8x128xf32>
    %c0_181 = arith.constant 0 : index
    %396 = arith.index_cast %88 : i32 to index
    %c0_182 = arith.constant 0 : index
    %397 = vector.load %arg8[%c0_181, %396, %c0_182] : memref<1x8x128xf32, #tpu.memory_space<vmem>>, vector<1x8x128xf32>
    %398 = vector.shape_cast %397 : vector<1x8x128xf32> to vector<8x128xf32>
    %399 = vector.shape_cast %395 : vector<8x128xf32> to vector<1x8x128xf32>
    tpu.vector_store %arg8[%c0_181, %396, %c0_182], %399 {strides = array<i32>} : memref<1x8x128xf32, #tpu.memory_space<vmem>>, vector<1x8x128xf32>,
    %c1_i32 = arith.constant 1 : i32
    return
  }
  func.func @transform_0(%arg0: i32) -> (i32, i32) {
    %c0_i32 = arith.constant 0 : i32
    %c0_i32_0 = arith.constant 0 : i32
    %c0_i32_1 = arith.constant 0 : i32
    return %c0_i32, %c0_i32_0 : i32, i32
  }
  func.func @transform_1(%arg0: i32) -> i32 {
    %c0_i32 = arith.constant 0 : i32
    %c0_i32_0 = arith.constant 0 : i32
    return %c0_i32 : i32
  }
  func.func @transform_2(%arg0: i32) -> (i32, i32) {
    %c0_i32 = arith.constant 0 : i32
    %c0_i32_0 = arith.constant 0 : i32
    %c0_i32_1 = arith.constant 0 : i32
    return %c0_i32, %c0_i32_0 : i32, i32
  }
  func.func @transform_3(%arg0: i32) -> i32 {
    %c0_i32 = arith.constant 0 : i32
    %c0_i32_0 = arith.constant 0 : i32
    return %c0_i32 : i32
  }
  func.func @transform_4(%arg0: i32) -> (i32, i32) {
    %c0_i32 = arith.constant 0 : i32
    %c0_i32_0 = arith.constant 0 : i32
    %c0_i32_1 = arith.constant 0 : i32
    return %c0_i32, %c0_i32_0 : i32, i32
  }
  func.func @transform_5(%arg0: i32) -> i32 {
    %c0_i32 = arith.constant 0 : i32
    %c0_i32_0 = arith.constant 0 : i32
    return %c0_i32 : i32
  }
  func.func @transform_6(%arg0: i32) -> (i32, i32, i32) {
    %c0_i32 = arith.constant 0 : i32
    %c0_i32_0 = arith.constant 0 : i32
    %c0_i32_1 = arith.constant 0 : i32
    return %c0_i32, %arg0, %c0_i32_0 : i32, i32, i32
  }
  func.func @transform_7(%arg0: i32) -> (i32, i32, i32) {
    %c0_i32 = arith.constant 0 : i32
    %c0_i32_0 = arith.constant 0 : i32
    %c0_i32_1 = arith.constant 0 : i32
    return %c0_i32, %arg0, %c0_i32_0 : i32, i32, i32
  }
}

</mosaic_0001>

<bundles_post_ra>
// kernel: tpu_custom_call.1
= control target key start
LH: loop header
LB: loop body
LE: loop exit
PB: predicated region body
PF: predicated region fallthrough
CT: control target
= control target key end

     0   :  { %13 = vsyncpa [#allocation6], 0  ;;  %s1168_s0 = inlined_call_operand.hbm [shape: f32[6,8], index: 0, kind: input, shape index: {}]   ;;  %s1169_s1 = inlined_call_operand.vmem [shape: f32[6], index: 1, kind: input, shape index: {}]   ;;  %s1170_s2 = inlined_call_operand.vmem [shape: f32[4,6], index: 2, kind: input, shape index: {}]   ;;  %s1171_s3 = inlined_call_operand.vmem [shape: f32[4], index: 3, kind: input, shape index: {}]   ;;  %s1172_s4 = inlined_call_operand.vmem [shape: f32[1,4], index: 4, kind: input, shape index: {}]   ;;  %s1173_s5 = inlined_call_operand.<no memory space> [shape: f32[1], index: 5, kind: input, shape index: {}]   ;;  %s1174_s6 = inlined_call_operand.hbm [shape: f32[8,8,128], index: 6, kind: input, shape index: {}]   ;;  %s1175_s7 = inlined_call_operand.hbm [shape: f32[1,8,128], index: 7, kind: output, shape index: {}]  }
   0x1   :  { %14 = vsyncpa [#allocation7], 0 }
   0x2   :  { %15 = vsyncpa [#allocation10], 0 }
   0x3   :  { %16 = vsyncpa [#allocation13], 0 }
   0x4   :  { %17 = vsyncpa [#allocation4], 0  ;;  %s43_s26 = sshll.u32 %s1170_s2, 4  ;;  %s44_s26 = int_to_ptr.vmem [resolvable:$true] %s43_s26 }
   0x5   :  { %18 = vsyncpa [#allocation5], 0  ;;  %s653_s27 = scalar_lea.vmem %s44_s26, 64  ;;  %p658_p1 = scmp.lt.s32.totalorder %s44_s26, %s44_s26 }
   0x6   :  { %p654_p0 = scmp.ne.s32.totalorder %s44_s26, %s653_s27  ;;  %p659_p2 = scmp.lt.s32.totalorder %s653_s27, %s653_s27 }
   0x8   :  { %p660_p3 = por %p659_p2, %p658_p1 }
   0xa   :  { %p661_p4 = pnand %p660_p3, %p654_p0 }
   0xc   :  { %664 = shalt.err (!%p661_p4)
}
   0xd   :  { %s767_s28 = smov [#allocation9]   ;;  %s665_s8 = scalar_lea.hbm %s1168_s0, 128 }
   0xe   :  { %46 = dma.vmem_to_smem %s44_s26, 64, %s767_s28, [#allocation10]  }
   0xf   :  { %p666_p5 = scmp.ne.s32.totalorder %s1168_s0, %s665_s8  ;;  %p669_p6 = scmp.lt.u32.totalorder %s665_s8, %s1168_s0 }
  0x11   :  { %p671_p7 = pnand %p669_p6, %p666_p5 }
  0x13   :  { %674 = shalt.err (!%p671_p7)
}
  0x14   :  { %s768_s12 = smov [#allocation3]   ;;  %s33_s17 = sshll.u32 %s1169_s1, 4  ;;  %s34_s17 = int_to_ptr.vmem [resolvable:$true] %s33_s17 }
  0x15   :  { %26 = dma.hbm_to_smem %s1168_s0, 128, %s768_s12, [#allocation6]  }
  0x16   :  { %s53_s20 = sshll.u32 %s1171_s3, 4  ;;  %s675_s21 = scalar_lea.vmem %s34_s17, 16  ;;  %s54_s20 = int_to_ptr.vmem [resolvable:$true] %s53_s20 }
  0x17   :  { %p676_p8 = scmp.ne.s32.totalorder %s34_s17, %s675_s21  ;;  %p680_p9 = scmp.lt.s32.totalorder %s34_s17, %s34_s17 }
  0x18   :  { %p681_p10 = scmp.lt.s32.totalorder %s675_s21, %s675_s21 }
  0x1a   :  { %p682_p11 = por %p681_p10, %p680_p9 }
  0x1c   :  { %p683_p12 = pnand %p682_p11, %p676_p8 }
  0x1e   :  { %686 = shalt.err (!%p683_p12)
}
  0x1f   :  { %s769_s22 = smov [#allocation8]   ;;  %s687_s0 = scalar_lea.vmem %s54_s20, 16 }
  0x20   :  { %36 = dma.vmem_to_smem %s34_s17, 16, %s769_s22, [#allocation7]  }
  0x21   :  { %p688_p13 = scmp.ne.s32.totalorder %s54_s20, %s687_s0  ;;  %p692_p0 = scmp.lt.s32.totalorder %s54_s20, %s54_s20 }
  0x22   :  { %p693_p1 = scmp.lt.s32.totalorder %s687_s0, %s687_s0 }
  0x24   :  { %p694_p2 = por %p693_p1, %p692_p0 }
  0x26   :  { %p695_p3 = pnand %p694_p2, %p688_p13 }
  0x28   :  { %698 = shalt.err (!%p695_p3)
}
  0x29   :  { %s770_s1 = smov [#allocation11]   ;;  %s63_s24 = sshll.u32 %s1172_s4, 4  ;;  %s64_s24 = int_to_ptr.vmem [resolvable:$true] %s63_s24 }
  0x2a   :  { %56 = dma.vmem_to_smem %s54_s20, 16, %s770_s1, [#allocation10]  }
  0x2b   :  { %s699_s25 = scalar_lea.vmem %s64_s24, 16  ;;  %p704_p5 = scmp.lt.s32.totalorder %s64_s24, %s64_s24 }
  0x2c   :  { %p700_p4 = scmp.ne.s32.totalorder %s64_s24, %s699_s25  ;;  %p705_p6 = scmp.lt.s32.totalorder %s699_s25, %s699_s25 }
  0x2e   :  { %p706_p7 = por %p705_p6, %p704_p5 }
  0x30   :  { %p707_p8 = pnand %p706_p7, %p700_p4 }
  0x32   :  { %710 = shalt.err (!%p707_p8)
}
  0x33   :  { %s771_s26 = smov [#allocation12]   ;;  %s772_s27 = smov [#allocation14]  }
  0x34   :  { %66 = dma.vmem_to_smem %s64_s24, 16, %s771_s26, [#allocation13]  }
  0x35   :  { %s74_s28 = sshll.u32 %s772_s27, 4  ;;  %s711_s8 = scalar_lea.hbm %s1174_s6, 1024  ;;  %s75_s28 = int_to_ptr.vmem [resolvable:$true] %s74_s28 }
  0x36   :  { %p712_p9 = scmp.ne.s32.totalorder %s1174_s6, %s711_s8  ;;  %p715_p10 = scmp.lt.u32.totalorder %s711_s8, %s1174_s6 }
  0x38   :  { %p717_p11 = pnand %p715_p10, %p712_p9 }
  0x3a   :  { %720 = shalt.err (!%p717_p11)
}
  0x3b   :  { %s721_s11 = scalar_lea.vmem %s75_s28, 1024  ;;  %p726_p13 = scmp.lt.s32.totalorder %s75_s28, %s75_s28 }
  0x3c   :  { %p722_p12 = scmp.ne.s32.totalorder %s75_s28, %s721_s11  ;;  %p727_p0 = scmp.lt.s32.totalorder %s721_s11, %s721_s11 }
  0x3e   :  { %p728_p1 = por %p727_p0, %p726_p13 }
  0x40   :  { %p729_p2 = pnand %p728_p1, %p722_p12 }
  0x42   :  { %732 = shalt.err (!%p729_p2)
}
  0x43   :  { %s773_s12 = smov 128   ;;  %s774_s13 = smov 8  }
  0x44   :  { %80 = dma.hbm_to_vmem [thread:$0]  %s1174_s6, 1024, %s75_s28, [#allocation4], %s773_s12, %s773_s12, %s774_s13  }
  0x45   :  { %755 = dma.done.wait [#allocation6], 128  }
  0x46   :  { %756 = vsyncadd [#allocation6], 4294967168 }
  0x47   :  { %757 = dma.done.wait [#allocation7], 16  }
  0x48   :  { %758 = vsyncadd [#allocation7], 4294967280 }
  0x49   :  { %759 = dma.done.wait [#allocation10], 80  }
  0x4a   :  { %760 = vsyncadd [#allocation10], 4294967216 }
  0x4b   :  { %761 = dma.done.wait [#allocation13], 16  }
  0x4c   :  { %762 = vsyncadd [#allocation13], 4294967280 }
  0x4d   :  { %763 = dma.done.wait [#allocation4], 1024  }
  0x4e   :  { %764 = vsyncadd [#allocation4], 4294966272 }
  0x4f   :  { %99 = sfence }
  0x50   :  { %s100_s16 = sld [smem:[#allocation3]]  ;;  %s519_s17 = sld [smem:[#allocation3 + $0x1]]  ;;  %v866_v0 = vld [vmem:[#allocation14] sm:$0xff]  ;;  %v868_v1 = vld [vmem:[#allocation14 + $0x8] sm:$0xff]  ;;  %v874_v2 = vld [vmem:[#allocation14 + $0x10] sm:$0xff] }
  0x51   :  { %s520_s18 = sld [smem:[#allocation3 + $0x2]]  ;;  %s852_s19 = sld [smem:[#allocation3 + $0x3]]  ;;  %v880_v3 = vld [vmem:[#allocation14 + $0x18] sm:$0xff]  ;;  %v882_v4 = vld [vmem:[#allocation14 + $0x20] sm:$0xff]  ;;  %v888_v7 = vld [vmem:[#allocation14 + $0x28] sm:$0xff] }
  0x52   :  { %s854_s20 = sld [smem:[#allocation3 + $0x4]]  ;;  %s856_s21 = sld [smem:[#allocation3 + $0x5]]  ;;  %v890_v8 = vld [vmem:[#allocation14 + $0x30] sm:$0xff]  ;;  %v917_v24 = vld [vmem:[#allocation14 + $0x38] sm:$0xff] }
  0x53   :  { %s858_s6 = sld [smem:[#allocation3 + $0x6]]  ;;  %s860_s22 = sld [smem:[#allocation3 + $0x7]] }
  0x54   :  { %s862_s0 = sld [smem:[#allocation3 + $0x80]]  ;;  %s864_s1 = sld [smem:[#allocation3 + $0x81]] }
  0x55   :  { %s870_s3 = sld [smem:[#allocation3 + $0x82]]  ;;  %s872_s23 = sld [smem:[#allocation3 + $0x83]] }
  0x56   :  { %s876_s24 = sld [smem:[#allocation3 + $0x84]]  ;;  %s878_s25 = sld [smem:[#allocation3 + $0x85]]  ;;  %v209_v5 = vstv %s100_s16  ;;  %v211_v6 = vstv %s519_s17 }
  0x57   :  { %s884_s26 = sld [smem:[#allocation3 + $0x86]]  ;;  %s886_s27 = sld [smem:[#allocation3 + $0x87]]  ;;  %v210_v9 = vmul.f32 %v209_v5, %v866_v0  ;;  %v212_v10 = vmul.f32 %v211_v6, %v868_v1  ;;  %v214_v11 = vstv %s520_s18  ;;  %v217_v12 = vstv %s852_s19 }
  0x58   :  { %s895_s28 = sld [smem:[#allocation3 + $0x100]]  ;;  %s897_s29 = sld [smem:[#allocation3 + $0x101]]  ;;  %v215_v13 = vmul.f32 %v214_v11, %v874_v2  ;;  %v220_v14 = vstv %s854_s20  ;;  %v223_v15 = vstv %s856_s21  ;;  %v218_v17 = vmul.f32 %v217_v12, %v880_v3 }
  0x59   :  { %s902_s30 = sld [smem:[#allocation3 + $0x102]]  ;;  %s904_s8 = sld [smem:[#allocation3 + $0x103]]  ;;  %v213_v16 = vadd.f32 %v212_v10, %v210_v9  ;;  %v221_v18 = vmul.f32 %v220_v14, %v882_v4  ;;  %v226_v19 = vstv %s858_s6  ;;  %v224_v20 = vmul.f32 %v223_v15, %v888_v7 }
  0x5a   :  { %s909_s9 = sld [smem:[#allocation3 + $0x104]]  ;;  %s911_s10 = sld [smem:[#allocation3 + $0x105]]  ;;  %v227_v21 = vmul.f32 %v226_v19, %v890_v8  ;;  %v238_v22 = vstv %s862_s0  ;;  %v240_v23 = vstv %s864_s1  ;;  %v229_v26 = vstv %s860_s22 }
  0x5b   :  { %v216_v25 = vadd.f32 %v215_v13, %v213_v16  ;;  %v239_v27 = vmul.f32 %v238_v22, %v866_v0  ;;  %v241_v28 = vmul.f32 %v240_v23, %v868_v1  ;;  %s922_s4 = sld [smem:[#allocation3 + $0x106]]  ;;  %s924_s2 = sld [smem:[#allocation3 + $0x180]]  ;;  %v243_v29 = vstv %s870_s3 }
  0x5c   :  { %v246_v30 = vstv %s872_s23  ;;  %v249_v31 = vstv %s876_s24  ;;  %v252_v32 = vstv %s878_s25  ;;  %s930_s11 = sld [smem:[#allocation3 + $0x107]]  ;;  %v244_v35 = vmul.f32 %v243_v29, %v874_v2  ;;  %s934_s12 = sld [smem:[#allocation3 + $0x181]] }
  0x5d   :  { %v219_v33 = vadd.f32 %v218_v17, %v216_v25  ;;  %v242_v34 = vadd.f32 %v241_v28, %v239_v27  ;;  %v247_v36 = vmul.f32 %v246_v30, %v880_v3  ;;  %s936_s13 = sld [smem:[#allocation3 + $0x182]]  ;;  %v230_v37 = vmul.f32 %v229_v26, %v917_v24  ;;  %s942_s14 = sld [smem:[#allocation3 + $0x183]] }
  0x5e   :  { %v250_v38 = vmul.f32 %v249_v31, %v882_v4  ;;  %v253_v39 = vmul.f32 %v252_v32, %v888_v7  ;;  %v255_v40 = vstv %s884_s26  ;;  %s944_s15 = sld [smem:[#allocation3 + $0x184]]  ;;  %v258_v44 = vstv %s886_s27  ;;  %s948_s16 = sld [smem:[#allocation3 + $0x185]] }
  0x5f   :  { %v222_v41 = vadd.f32 %v221_v18, %v219_v33  ;;  %v245_v42 = vadd.f32 %v244_v35, %v242_v34  ;;  %v256_v43 = vmul.f32 %v255_v40, %v890_v8  ;;  %s950_s17 = sld [smem:[#allocation3 + $0x186]]  ;;  %v267_v45 = vstv %s895_s28  ;;  %s958_s18 = sld [smem:[#allocation3 + $0x187]] }
  0x60   :  { %v269_v46 = vstv %s897_s29  ;;  %v272_v47 = vstv %s902_s30  ;;  %v275_v48 = vstv %s904_s8  ;;  %v268_v51 = vmul.f32 %v267_v45, %v866_v0  ;;  %s964_s19 = sld [smem:[#allocation3 + $0x200]]  ;;  %s967_s20 = sld [smem:[#allocation3 + $0x201]] }
  0x61   :  { %v225_v49 = vadd.f32 %v224_v20, %v222_v41  ;;  %v248_v50 = vadd.f32 %v247_v36, %v245_v42  ;;  %v270_v52 = vmul.f32 %v269_v46, %v868_v1  ;;  %v259_v53 = vmul.f32 %v258_v44, %v917_v24  ;;  %s969_s21 = sld [smem:[#allocation3 + $0x202]]  ;;  %s975_s6 = sld [smem:[#allocation3 + $0x203]] }
  0x62   :  { %v273_v54 = vmul.f32 %v272_v47, %v874_v2  ;;  %v278_v55 = vstv %s909_s9  ;;  %v281_v56 = vstv %s911_s10  ;;  %v276_v60 = vmul.f32 %v275_v48, %v880_v3  ;;  %s978_s22 = sld [smem:[#allocation3 + $0x204]]  ;;  %s984_s0 = sld [smem:[#allocation3 + $0x205]] }
  0x63   :  { %v228_v57 = vadd.f32 %v227_v21, %v225_v49  ;;  %v251_v58 = vadd.f32 %v250_v38, %v248_v50  ;;  %v271_v59 = vadd.f32 %v270_v52, %v268_v51  ;;  %v279_v61 = vmul.f32 %v278_v55, %v882_v4  ;;  %s986_s1 = sld [smem:[#allocation3 + $0x206]]  ;;  %s990_s3 = sld [smem:[#allocation8]] }
  0x64   :  { %v282_v62 = vmul.f32 %v281_v56, %v888_v7  ;;  %v284_v63 = vstv %s922_s4  ;;  %v296_v5 = vstv %s924_s2  ;;  %v287_v11 = vstv %s930_s11  ;;  %s992_s23 = sld [smem:[#allocation8 + $0x1]]  ;;  %s998_s24 = sld [smem:[#allocation8 + $0x2]] }
  0x65   :  { %v231_v6 = vadd.f32 %v230_v37, %v228_v57  ;;  %v254_v9 = vadd.f32 %v253_v39, %v251_v58  ;;  %v274_v10 = vadd.f32 %v273_v54, %v271_v59  ;;  %v285_v12 = vmul.f32 %v284_v63, %v890_v8  ;;  %s1000_s25 = sld [smem:[#allocation8 + $0x3]]  ;;  %s1007_s26 = sld [smem:[#allocation3 + $0x207]] }
  0x66   :  { %v297_v13 = vmul.f32 %v296_v5, %v866_v0  ;;  %v298_v14 = vstv %s934_s12  ;;  %v301_v15 = vstv %s936_s13  ;;  %v304_v20 = vstv %s942_s14  ;;  %s1015_s27 = sld [smem:[#allocation3 + $0x280]]  ;;  %s1017_s28 = sld [smem:[#allocation3 + $0x281]] }
  0x67   :  { %v257_v16 = vadd.f32 %v256_v43, %v254_v9  ;;  %v277_v17 = vadd.f32 %v276_v60, %v274_v10  ;;  %v299_v18 = vmul.f32 %v298_v14, %v868_v1  ;;  %v302_v19 = vmul.f32 %v301_v15, %v874_v2  ;;  %s1021_s29 = sld [smem:[#allocation3 + $0x282]]  ;;  %s1023_s30 = sld [smem:[#allocation3 + $0x283]] }
  0x68   :  { %v307_v21 = vstv %s944_s15  ;;  %v310_v22 = vstv %s948_s16  ;;  %v313_v23 = vstv %s950_s17  ;;  %v288_v26 = vmul.f32 %v287_v11, %v917_v24  ;;  %s1029_s8 = sld [smem:[#allocation3 + $0x284]]  ;;  %s1031_s9 = sld [smem:[#allocation3 + $0x285]] }
  0x69   :  { %v280_v25 = vadd.f32 %v279_v61, %v277_v17  ;;  %v300_v27 = vadd.f32 %v299_v18, %v297_v13  ;;  %v305_v28 = vmul.f32 %v304_v20, %v880_v3  ;;  %v260_v29 = vadd.f32 %v259_v53, %v257_v16  ;;  %s1039_s10 = sld [smem:[#allocation3 + $0x286]]  ;;  %s1041_s4 = sld [smem:[#allocation8 + $0x4]] }
  0x6a   :  { %v308_v30 = vmul.f32 %v307_v21, %v882_v4  ;;  %v311_v31 = vmul.f32 %v310_v22, %v888_v7  ;;  %v316_v32 = vstv %s958_s18  ;;  %v314_v35 = vmul.f32 %v313_v23, %v890_v8  ;;  %s1045_s2 = sld [smem:[#allocation3 + $0x287]]  ;;  %s1060_s11 = sld [smem:[#allocation8 + $0x5]] }
  0x6b   :  { %v283_v33 = vadd.f32 %v282_v62, %v280_v25  ;;  %v303_v34 = vadd.f32 %v302_v19, %v300_v27  ;;  %v325_v36 = vstv %s964_s19  ;;  %v317_v37 = vmul.f32 %v316_v32, %v917_v24  ;;  %s1067_s12 = sld [smem:[#allocation9]]  ;;  %s1069_s13 = sld [smem:[#allocation9 + $0x1]] }
  0x6c   :  { %v326_v38 = vmul.f32 %v325_v36, %v866_v0  ;;  %v327_v39 = vstv %s967_s20  ;;  %v330_v40 = vstv %s969_s21  ;;  %v333_v44 = vstv %s975_s6  ;;  %s1072_s14 = sld [smem:[#allocation9 + $0x2]]  ;;  %s1074_s15 = sld [smem:[#allocation9 + $0x80]] }
  0x6d   :  { %v286_v41 = vadd.f32 %v285_v12, %v283_v33  ;;  %v306_v42 = vadd.f32 %v305_v28, %v303_v34  ;;  %v328_v43 = vmul.f32 %v327_v39, %v868_v1  ;;  %v232_v45 = vstv %s990_s3  ;;  %s1076_s16 = sld [smem:[#allocation9 + $0x81]]  ;;  %s1078_s17 = sld [smem:[#allocation9 + $0x100]] }
  0x6e   :  { %v261_v46 = vstv %s992_s23  ;;  %v331_v47 = vmul.f32 %v330_v40, %v874_v2  ;;  %v336_v48 = vstv %s978_s22  ;;  %v233_v49 = vadd.f32 %v232_v45, %v231_v6  ;;  %s1080_s18 = sld [smem:[#allocation9 + $0x180]]  ;;  %s1082_s19 = sld [smem:[#allocation9 + $0x101]] }
  0x6f   :  { %v262_v50 = vadd.f32 %v261_v46, %v260_v29  ;;  %v289_v51 = vadd.f32 %v288_v26, %v286_v41  ;;  %v290_v52 = vstv %s998_s24  ;;  %v309_v53 = vadd.f32 %v308_v30, %v306_v42  ;;  %s1084_s20 = sld [smem:[#allocation9 + $0x181]]  ;;  %s1087_s21 = sld [smem:[#allocation9 + $0x82]] }
  0x70   :  { %v319_v54 = vstv %s1000_s25  ;;  %v329_v55 = vadd.f32 %v328_v43, %v326_v38  ;;  %v334_v56 = vmul.f32 %v333_v44, %v880_v3  ;;  %v234_v57 = vmul.f32 1.442695, %v233_v49  ;;  %s1089_s6 = sld [smem:[#allocation9 + $0x102]]  ;;  %s1105_s3 = sld [smem:[#allocation9 + $0x103]] }
  0x71   :  { %v291_v58 = vadd.f32 %v290_v52, %v289_v51  ;;  %v339_v59 = vstv %s984_s0  ;;  %v342_v60 = vstv %s986_s1  ;;  %v263_v61 = vmul.f32 1.442695, %v262_v50  ;;  %s1091_s22 = sld [smem:[#allocation9 + $0x182]]  ;;  %s1098_s0 = sld [smem:[#allocation9 + $0x3]] }
  0x72   :  { %v312_v62 = vadd.f32 %v311_v31, %v309_v53  ;;  %v332_v63 = vadd.f32 %v331_v47, %v329_v55  ;;  %v337_v5 = vmul.f32 %v336_v48, %v882_v4  ;;  %609 = vpow2.f32 %v234_v57  ;;  %s1100_s1 = sld [smem:[#allocation9 + $0x83]]  ;;  %s1113_s24 = sld [smem:[#allocation9 + $0x4]] }
  0x73   :  { %v292_v6 = vmul.f32 1.442695, %v291_v58  ;;  %v340_v9 = vmul.f32 %v339_v59, %v888_v7  ;;  %v345_v10 = vstv %s1007_s26  ;;  %611 = vpow2.f32 %v263_v61  ;;  %s1107_s23 = sld [smem:[#allocation9 + $0x183]]  ;;  %s1115_s25 = sld [smem:[#allocation9 + $0x84]] }
  0x74   :  { %v315_v11 = vadd.f32 %v314_v35, %v312_v62  ;;  %v335_v12 = vadd.f32 %v334_v56, %v332_v63  ;;  %v343_v13 = vmul.f32 %v342_v60, %v890_v8  ;;  %v346_v14 = vmul.f32 %v345_v10, %v917_v24  ;;  %s1117_s26 = sld [smem:[#allocation9 + $0x104]] }
  0x75   :  { %613 = vpow2.f32 %v292_v6  ;;  %v354_v15 = vstv %s1015_s27  ;;  %v356_v16 = vstv %s1017_s28  ;;  %v359_v21 = vstv %s1021_s29  ;;  %s1119_s27 = sld [smem:[#allocation9 + $0x184]]  ;;  %s1125_s28 = sld [smem:[#allocation9 + $0x5]] }
  0x76   :  { %v318_v17 = vadd.f32 %v317_v37, %v315_v11  ;;  %v338_v18 = vadd.f32 %v337_v5, %v335_v12  ;;  %v355_v19 = vmul.f32 %v354_v15, %v866_v0  ;;  %v357_v20 = vmul.f32 %v356_v16, %v868_v1  ;;  %s1127_s29 = sld [smem:[#allocation9 + $0x85]] }
  0x77   :  { %v362_v22 = vstv %s1023_s30  ;;  %v365_v23 = vstv %s1029_s8  ;;  %v368_v25 = vstv %s1031_s9  ;;  %v360_v29 = vmul.f32 %v359_v21, %v874_v2  ;;  %s1129_s30 = sld [smem:[#allocation9 + $0x105]]  ;;  %s1137_s9 = sld [smem:[#allocation11]] }
  0x78   :  { %v320_v26 = vadd.f32 %v319_v54, %v318_v17  ;;  %v341_v27 = vadd.f32 %v340_v9, %v338_v18  ;;  %v358_v28 = vadd.f32 %v357_v20, %v355_v19  ;;  %v363_v30 = vmul.f32 %v362_v22, %v880_v3  ;;  %s1131_s8 = sld [smem:[#allocation9 + $0x185]] }
  0x79   :  { %v366_v0 = vmul.f32 %v365_v23, %v882_v4  ;;  %v348_v1 = vstv %s1041_s4  ;;  %v369_v34 = vmul.f32 %v368_v25, %v888_v7  ;;  %v371_v35 = vstv %s1039_s10  ;;  %s1139_s10 = sld [smem:[#allocation11 + $0x1]]  ;;  %s1141_s4 = sld [smem:[#allocation11 + $0x2]] }
  0x7a   :  { %v321_v31 = vmul.f32 1.442695, %v320_v26  ;;  %v344_v32 = vadd.f32 %v343_v13, %v341_v27  ;;  %v361_v33 = vadd.f32 %v360_v29, %v358_v28  ;;  %v374_v38 = vstv %s1045_s2  ;;  %s1143_s2 = sld [smem:[#allocation11 + $0x3]] }
  0x7b   :  { %v372_v42 = vmul.f32 %v371_v35, %v890_v8  ;;  %v375_v7 = vmul.f32 %v374_v38, %v917_v24  ;;  %v377_v24 = vstv %s1060_s11  ;;  %v383_v52 = vstv %s1067_s12  ;;  %s182_s11 = sld [smem:[#allocation12]]  ;;  %s597_s12 = sld [smem:[#allocation12 + $0x1]] }
  0x7c   :  { %615 = vpow2.f32 %v321_v31  ;;  %v347_v36 = vadd.f32 %v346_v14, %v344_v32  ;;  %v364_v37 = vadd.f32 %v363_v30, %v361_v33  ;;  %v610_v39 = vpop.eup %609  ;;  %v385_v53 = vstv %s1069_s13  ;;  %s598_s13 = sld [smem:[#allocation12 + $0x2]] }
  0x7d   :  { %v612_v40 = vpop.eup %611  ;;  %v236_v2 = vadd.f32 1.0, %v610_v39  ;;  %v406_v55 = vstv %s1074_s15  ;;  %v429_v56 = vstv %s1078_s17  ;;  %v452_v57 = vstv %s1080_s18  ;;  %s775_s17 = smov [#allocation15]  }
  0x7e   :  { %v349_v41 = vadd.f32 %v348_v1, %v347_v36  ;;  %v367_v3 = vadd.f32 %v366_v0, %v364_v37  ;;  %v265_v4 = vadd.f32 1.0, %v612_v40  ;;  %v408_v59 = vstv %s1076_s16  ;;  %s499_s18 = sshll.u32 %s775_s17, 4  ;;  %s500_s18 = int_to_ptr.vmem [resolvable:$true] %s499_s18 }
  0x7f   :  { %v614_v43 = vpop.eup %613  ;;  %617 = vrcp.f32 %v236_v2  ;;  %v431_v60 = vstv %s1082_s19  ;;  %v454_v61 = vstv %s1084_s20  ;;  %v388_v63 = vstv %s1072_s14  ;;  %s599_s14 = sld [smem:[#allocation12 + $0x3]]  ;;  %s733_s19 = scalar_lea.vmem %s500_s18, 128 }
  0x80   :  { %v294_v44 = vadd.f32 1.0, %v614_v43  ;;  %v350_v45 = vmul.f32 1.442695, %v349_v41  ;;  %v370_v46 = vadd.f32 %v369_v34, %v367_v3  ;;  %619 = vrcp.f32 %v265_v4  ;;  %p734_p3 = scmp.ne.s32.totalorder %s500_s18, %s733_s19  ;;  %p738_p4 = scmp.lt.s32.totalorder %s500_s18, %s500_s18 }
  0x81   :  { %v411_v5 = vstv %s1087_s21  ;;  %v434_v6 = vstv %s1089_s6  ;;  %v457_v19 = vstv %s1091_s22  ;;  %v391_v30 = vstv %s1098_s0  ;;  %p739_p5 = scmp.lt.s32.totalorder %s733_s19, %s733_s19 }
  0x82   :  { %v373_v8 = vadd.f32 %v372_v42, %v370_v46  ;;  %621 = vpow2.f32 %v350_v45  ;;  %v414_v32 = vstv %s1100_s1  ;;  %v437_v33 = vstv %s1105_s3 }
  0x83   :  { %623 = vrcp.f32 %v294_v44  ;;  %v460_v0 = vstv %s1107_s23  ;;  %v394_v41 = vstv %s1113_s24  ;;  %v417_v3 = vstv %s1115_s25  ;;  %p740_p6 = por %p739_p5, %p738_p4 }
  0x84   :  { %v376_v47 = vadd.f32 %v375_v7, %v373_v8  ;;  %v440_v42 = vstv %s1117_s26  ;;  %v463_v43 = vstv %s1119_s27 }
  0x85   :  { %p741_p7 = pnand %p740_p6, %p734_p3 }
  0x86   :  { %v616_v48 = vpop.eup %615  ;;  %v378_v49 = vadd.f32 %v377_v24, %v376_v47 }
  0x87   :  { %v323_v50 = vadd.f32 1.0, %v616_v48 }
  0x88   :  { %v379_v51 = vmul.f32 1.442695, %v378_v49  ;;  %v397_v49 = vstv %s1125_s28 }
  0x89   :  { %625 = vrcp.f32 %v323_v50  ;;  %v618_v54 = vpop.eup %617  ;;  %v420_v50 = vstv %s1127_s29 }
  0x8a   :  { %627 = vpow2.f32 %v379_v51  ;;  %v620_v58 = vpop.eup %619  ;;  %v384_v62 = vmul.f32 %v618_v54, %v383_v52  ;;  %v407_v11 = vmul.f32 %v618_v54, %v406_v55  ;;  %v430_v12 = vmul.f32 %v618_v54, %v429_v56 }
  0x8b   :  { %v386_v10 = vmul.f32 %v620_v58, %v385_v53  ;;  %v453_v13 = vmul.f32 %v618_v54, %v452_v57  ;;  %v409_v16 = vmul.f32 %v620_v58, %v408_v59  ;;  %v432_v17 = vmul.f32 %v620_v58, %v431_v60 }
  0x8c   :  { %v622_v9 = vpop.eup %621  ;;  %v455_v18 = vmul.f32 %v620_v58, %v454_v61  ;;  %v443_v51 = vstv %s1129_s30  ;;  %v466_v52 = vstv %s1131_s8 }
  0x8d   :  { %v624_v14 = vpop.eup %623  ;;  %v352_v15 = vadd.f32 1.0, %v622_v9  ;;  %v387_v20 = vadd.f32 %v386_v10, %v384_v62  ;;  %v410_v25 = vadd.f32 %v409_v16, %v407_v11  ;;  %v433_v26 = vadd.f32 %v432_v17, %v430_v12 }
  0x8e   :  { %v389_v21 = vmul.f32 %v624_v14, %v388_v63  ;;  %v412_v22 = vmul.f32 %v624_v14, %v411_v5  ;;  %v435_v23 = vmul.f32 %v624_v14, %v434_v6  ;;  %v456_v27 = vadd.f32 %v455_v18, %v453_v13 }
  0x8f   :  { %629 = vrcp.f32 %v352_v15  ;;  %v458_v28 = vmul.f32 %v624_v14, %v457_v19  ;;  %v400_v62 = vstv %s1137_s9  ;;  %v423_v63 = vstv %s1139_s10 }
  0x90   :  { %v390_v34 = vadd.f32 %v389_v21, %v387_v20  ;;  %v413_v36 = vadd.f32 %v412_v22, %v410_v25  ;;  %v436_v37 = vadd.f32 %v435_v23, %v433_v26  ;;  %v446_v5 = vstv %s1141_s4 }
  0x91   :  { %v459_v38 = vadd.f32 %v458_v28, %v456_v27  ;;  %v469_v6 = vstv %s1143_s2 }
  0x93   :  { %v626_v29 = vpop.eup %625 }
  0x94   :  { %v628_v31 = vpop.eup %627  ;;  %v392_v35 = vmul.f32 %v626_v29, %v391_v30  ;;  %v415_v39 = vmul.f32 %v626_v29, %v414_v32  ;;  %v438_v40 = vmul.f32 %v626_v29, %v437_v33  ;;  %v461_v2 = vmul.f32 %v626_v29, %v460_v0 }
  0x95   :  { %v381_v1 = vadd.f32 1.0, %v628_v31  ;;  %v475_v30 = vstv %s182_s11  ;;  %v477_v31 = vstv %s597_s12  ;;  %v480_v33 = vstv %s598_s13 }
  0x96   :  { %v393_v7 = vadd.f32 %v392_v35, %v390_v34  ;;  %v416_v44 = vadd.f32 %v415_v39, %v413_v36  ;;  %v439_v45 = vadd.f32 %v438_v40, %v436_v37  ;;  %v462_v46 = vadd.f32 %v461_v2, %v459_v38 }
  0x97   :  { %631 = vrcp.f32 %v381_v1  ;;  %v483_v34 = vstv %s599_s14 }
  0x99   :  { %v630_v4 = vpop.eup %629 }
  0x9a   :  { %v395_v8 = vmul.f32 %v630_v4, %v394_v41  ;;  %v418_v24 = vmul.f32 %v630_v4, %v417_v3  ;;  %v441_v47 = vmul.f32 %v630_v4, %v440_v42  ;;  %v464_v48 = vmul.f32 %v630_v4, %v463_v43 }
  0x9b   :  { %v486_v41 = vstv %s1173_s5 }
  0x9c   :  { %v396_v53 = vadd.f32 %v395_v8, %v393_v7  ;;  %v419_v54 = vadd.f32 %v418_v24, %v416_v44  ;;  %v442_v55 = vadd.f32 %v441_v47, %v439_v45  ;;  %v465_v56 = vadd.f32 %v464_v48, %v462_v46 }
  0xa1   :  { %v632_v57 = vpop.eup %631 }
  0xa2   :  { %v398_v58 = vmul.f32 %v632_v57, %v397_v49  ;;  %v421_v59 = vmul.f32 %v632_v57, %v420_v50  ;;  %v444_v60 = vmul.f32 %v632_v57, %v443_v51  ;;  %v467_v61 = vmul.f32 %v632_v57, %v466_v52 }
  0xa4   :  { %v399_v9 = vadd.f32 %v398_v58, %v396_v53  ;;  %v422_v10 = vadd.f32 %v421_v59, %v419_v54  ;;  %v445_v11 = vadd.f32 %v444_v60, %v442_v55  ;;  %v468_v12 = vadd.f32 %v467_v61, %v465_v56 }
  0xa6   :  { %v401_v13 = vadd.f32 %v400_v62, %v399_v9  ;;  %v424_v14 = vadd.f32 %v423_v63, %v422_v10  ;;  %v447_v15 = vadd.f32 %v446_v5, %v445_v11  ;;  %v470_v16 = vadd.f32 %v469_v6, %v468_v12 }
  0xa8   :  { %v402_v17 = vmul.f32 1.442695, %v401_v13  ;;  %v425_v18 = vmul.f32 1.442695, %v424_v14  ;;  %v448_v19 = vmul.f32 1.442695, %v447_v15 }
  0xa9   :  { %v471_v20 = vmul.f32 1.442695, %v470_v16 }
  0xaa   :  { %633 = vpow2.f32 %v402_v17 }
  0xab   :  { %635 = vpow2.f32 %v425_v18 }
  0xac   :  { %637 = vpow2.f32 %v448_v19 }
  0xad   :  { %639 = vpow2.f32 %v471_v20 }
  0xb4   :  { %v634_v21 = vpop.eup %633 }
  0xb5   :  { %v636_v22 = vpop.eup %635  ;;  %v404_v23 = vadd.f32 1.0, %v634_v21 }
  0xb6   :  { %v638_v25 = vpop.eup %637  ;;  %v427_v26 = vadd.f32 1.0, %v636_v22 }
  0xb7   :  { %v640_v27 = vpop.eup %639  ;;  %641 = vrcp.f32 %v404_v23  ;;  %v450_v28 = vadd.f32 1.0, %v638_v25 }
  0xb8   :  { %643 = vrcp.f32 %v427_v26  ;;  %v473_v29 = vadd.f32 1.0, %v640_v27 }
  0xb9   :  { %645 = vrcp.f32 %v450_v28 }
  0xba   :  { %647 = vrcp.f32 %v473_v29 }
  0xc1   :  { %v642_v32 = vpop.eup %641 }
  0xc2   :  { %v644_v0 = vpop.eup %643  ;;  %v476_v1 = vmul.f32 %v642_v32, %v475_v30 }
  0xc3   :  { %v646_v35 = vpop.eup %645  ;;  %v478_v36 = vmul.f32 %v644_v0, %v477_v31 }
  0xc4   :  { %v648_v37 = vpop.eup %647  ;;  %v481_v38 = vmul.f32 %v646_v35, %v480_v33 }
  0xc5   :  { %v479_v39 = vadd.f32 %v478_v36, %v476_v1  ;;  %v484_v40 = vmul.f32 %v648_v37, %v483_v34 }
  0xc7   :  { %v482_v2 = vadd.f32 %v481_v38, %v479_v39 }
  0xc9   :  { %v485_v3 = vadd.f32 %v484_v40, %v482_v2 }
  0xcb   :  { %v487_v42 = vadd.f32 %v486_v41, %v485_v3 }
  0xcd   :  { %v488_v43 = vmul.f32 1.442695, %v487_v42 }
  0xcf   :  { %649 = vpow2.f32 %v488_v43 }
  0xd9   :  { %v650_v4 = vpop.eup %649 }
  0xda   :  { %v490_v7 = vadd.f32 1.0, %v650_v4 }
  0xdc   :  { %651 = vrcp.f32 %v490_v7 }
  0xe6   :  { %v652_v44 = vpop.eup %651 }
  0xe7   :  { %492 = vst [vmem:[#allocation15] sm:$0xff] %v652_v44 }
  0xe8   :  { %744 = shalt.err (!%p741_p7)
}
  0xe9   :  { %s745_s21 = scalar_lea.hbm %s1175_s7, 128 }
  0xea   :  { %p746_p8 = scmp.ne.s32.totalorder %s1175_s7, %s745_s21  ;;  %p749_p9 = scmp.lt.u32.totalorder %s745_s21, %s1175_s7 }
  0xec   :  { %p751_p10 = pnand %p749_p9, %p746_p8 }
  0xee   :  { %754 = shalt.err (!%p751_p10)
}
  0xef   :  { %502 = dma.vmem_to_hbm [thread:$0]  %s500_s18, 128, %s1175_s7, [#allocation5]  }
  0xf0   :  { %765 = dma.done.wait [#allocation5], 128  }
  0xf1   :  { %766 = vsyncadd [#allocation5], 4294967168 }
  0xf2   :  { %506 = vsyncpa [#allocation4], 1 }
  0xf3   :  { %507 = vsyncpa [#allocation5], 1 }
  0xf4   :  { %508 = vsyncpa [#allocation6], 1 }
  0xf5   :  { %509 = vsyncpa [#allocation7], 1 }
  0xf6   :  { %510 = vsyncpa [#allocation10], 1 }
  0xf7   :  { %511 = vsyncpa [#allocation13], 1 }

</bundles_post_ra>
